<compile_context>
chip_gen: v7x
topology: tpu7x:2x2x1
jax: 0.10.0
libtpu: 0.0.40
codegen_flags: <defaults>
</compile_context>

<pallas_src>
import functools

import jax
import jax.numpy as jnp
import numpy as np
from jax.experimental import pallas as pl
from jax.experimental.pallas import tpu as pltpu


# ----------------------------------------------------------------------------
# Deterministic "LatticeScaler" parameters (default buffers: mu=0, sigma=1).
# ----------------------------------------------------------------------------
def make_lattice_scaler(lengths_mu=0.0, lengths_sigma=1.0,
                        angles_mu=0.0, angles_sigma=1.0):
    def _vec(v):
        v = jnp.asarray(v, jnp.float32)
        return jnp.broadcast_to(v, (1, 3)).astype(jnp.float32)
    return dict(
        lengths_mu=_vec(lengths_mu),
        lengths_sigma=_vec(lengths_sigma),
        angles_mu=_vec(angles_mu),
        angles_sigma=_vec(angles_sigma),
    )


# ----------------------------------------------------------------------------
# Glue: (B, 3, 3) lattice matrices -> (lengths (B,3), angles (B,3) [degrees]).
# TODO(synk): jnp.arccos has no Pallas/Mosaic TPU lowering, so the angle
#             extraction stays in plain JAX; normalisation + distance + mean
#             reduction run in the Pallas kernel.
# ----------------------------------------------------------------------------
def lattice_to_params(lattice):
    lattice = lattice.astype(jnp.float32)
    lengths = jnp.sqrt(jnp.sum(lattice * lattice, axis=-1))          # (B, 3)
    va, vb, vc = lattice[:, 0, :], lattice[:, 1, :], lattice[:, 2, :]
    la, lb, lc = lengths[:, 0], lengths[:, 1], lengths[:, 2]
    cos_alpha = jnp.sum(vb * vc, axis=-1) / (lb * lc)
    cos_beta = jnp.sum(va * vc, axis=-1) / (la * lc)
    cos_gamma = jnp.sum(va * vb, axis=-1) / (la * lb)
    cosines = jnp.stack([cos_alpha, cos_beta, cos_gamma], axis=1)    # (B, 3)
    angles = jnp.degrees(jnp.arccos(jnp.clip(cosines, -1.0, 1.0)))   # (B, 3)
    return lengths, angles


# ----------------------------------------------------------------------------
# Pallas kernel: lane-dense normalised distance with grid reduction.
#   data_ref   : (4, 3, TB)  planes = [len_s, ang_s, len_t, ang_t]
#   inv_sig_ref: (2, 3, 1)   planes = [1/sigma_lengths, 1/sigma_angles]
#   out_ref    : (1, 1) SMEM scalar loss
#   acc_ref    : (1,)  SMEM scratch accumulator (persists across grid steps)
# ----------------------------------------------------------------------------
def _lattice_loss_kernel(data_ref, inv_sig_ref, out_ref, acc_ref,
                         *, distance: str, inv_n: float):
    i = pl.program_id(0)

    @pl.when(i == 0)
    def _init():
        acc_ref[0] = jnp.float32(0.0)

    len_s = data_ref[0]          # (3, TB)
    ang_s = data_ref[1]
    len_t = data_ref[2]
    ang_t = data_ref[3]

    # mu cancels in the difference; fused log: log(ls) - log(lt) = log(ls/lt).
    d_len = jnp.log(len_s / len_t) * inv_sig_ref[0]      # (3,TB) * (3,1)
    d_ang = (ang_s - ang_t) * inv_sig_ref[1]

    if distance == "l1":
        part = jnp.sum(jnp.abs(d_len)) + jnp.sum(jnp.abs(d_ang))
    else:  # "mse"
        part = jnp.sum(d_len * d_len) + jnp.sum(d_ang * d_ang)

    acc_ref[0] += part

    @pl.when(i == pl.num_programs(0) - 1)
    def _finalize():
        out_ref[0, 0] = acc_ref[0] * inv_n


def _params_loss_pallas(len_s, ang_s, len_t, ang_t, scaler, distance):
    batch = len_s.shape[0]
    n_total = float(batch * 6)

    # Lane-dense packing: batch on the lane axis, padded to a multiple of the
    # block width TB (itself a multiple of 128).
    lane = 128
    bp_min = ((batch + lane - 1) // lane) * lane
    tb = min(bp_min, 2048)
    bp = ((batch + tb - 1) // tb) * tb
    num_blocks = bp // tb

    def pack(x, pad_value):
        x = x.astype(jnp.float32).T                              # (3, B)
        return jnp.pad(x, ((0, 0), (0, bp - batch)),
                       constant_values=pad_value)                # (3, Bp)

    # Padding lanes: identical src/tgt (lengths=1 -> log(1/1)=0, angles=0)
    # so they contribute exactly zero to either distance.
    data = jnp.stack([pack(len_s, 1.0), pack(ang_s, 0.0),
                      pack(len_t, 1.0), pack(ang_t, 0.0)], axis=0)  # (4,3,Bp)

    inv_sig = jnp.stack([
        (1.0 / scaler["lengths_sigma"].astype(jnp.float32)).reshape(3, 1),
        (1.0 / scaler["angles_sigma"].astype(jnp.float32)).reshape(3, 1),
    ], axis=0)                                                      # (2,3,1)

    kernel = functools.partial(_lattice_loss_kernel,
                               distance=distance, inv_n=1.0 / n_total)

    out = pl.pallas_call(
        kernel,
        out_shape=jax.ShapeDtypeStruct((1, 1), jnp.float32),
        grid_spec=pltpu.PrefetchScalarGridSpec(
            num_scalar_prefetch=0,
            grid=(num_blocks,),
            in_specs=[
                pl.BlockSpec((4, 3, tb), lambda i: (0, 0, i)),
                pl.BlockSpec((2, 3, 1), lambda i: (0, 0, 0)),
            ],
            out_specs=pl.BlockSpec(memory_space=pltpu.MemorySpace.SMEM),
            scratch_shapes=[pltpu.SMEM((1,), jnp.float32)],
        ),
        compiler_params=pltpu.CompilerParams(
            dimension_semantics=("arbitrary",)),
    )(data, inv_sig)
    return out[0, 0]


# ----------------------------------------------------------------------------
# Forward-equivalent wrapper (mirrors LatticeParametersLoss.forward, including
# the reference's branching on `target`'s type for BOTH arguments).
# ----------------------------------------------------------------------------
def lattice_parameters_loss(source, target, scaler=None, distance="l1"):
    assert distance in ("l1", "mse")
    if scaler is None:
        scaler = make_lattice_scaler()
    if isinstance(target, tuple):
        # normalise(...) path: inputs already (lengths, angles) tuples
        len_s, ang_s = source
        len_t, ang_t = target
    else:
        # normalise_lattice(...) path: inputs are (B, 3, 3) cell matrices
        len_s, ang_s = lattice_to_params(source)
        len_t, ang_t = lattice_to_params(target)
    return _params_loss_pallas(len_s, ang_s, len_t, ang_t, scaler, distance)


# ----------------------------------------------------------------------------
# Pure-JAX references (for correctness checking only).
# ----------------------------------------------------------------------------
def _reference_from_params(len_s, ang_s, len_t, ang_t, scaler, distance):
    y_s = jnp.concatenate(
        [(jnp.log(len_s) - scaler["lengths_mu"]) / scaler["lengths_sigma"],
         (ang_s - scaler["angles_mu"]) / scaler["angles_sigma"]], axis=1)
    y_t = jnp.concatenate(
        [(jnp.log(len_t) - scaler["lengths_mu"]) / scaler["lengths_sigma"],
         (ang_t - scaler["angles_mu"]) / scaler["angles_sigma"]], axis=1)
    d = y_s - y_t
    return jnp.mean(jnp.abs(d)) if distance == "l1" else jnp.mean(d * d)


def _reference_loss(source, target, scaler, distance):
    len_s, ang_s = lattice_to_params(source)
    len_t, ang_t = lattice_to_params(target)
    return _reference_from_params(len_s, ang_s, len_t, ang_t, scaler, distance)


if __name__ == "__main__":
    key = jax.random.PRNGKey(0)
    k1, k2 = jax.random.split(key)

    batch = 8
    base = jnp.eye(3, dtype=jnp.float32) * 4.0
    lat_src = base[None] + 0.3 * jax.random.normal(k1, (batch, 3, 3), jnp.float32)
    lat_tgt = base[None] + 0.3 * jax.random.normal(k2, (batch, 3, 3), jnp.float32)

    scaler_default = make_lattice_scaler()
    # Non-trivial scaler exercises the sigma scaling and the mu cancellation.
    scaler_custom = make_lattice_scaler(
        lengths_mu=[0.5, -0.3, 1.2], lengths_sigma=[0.7, 1.5, 2.0],
        angles_mu=[90.0, 85.0, 95.0], angles_sigma=[10.0, 12.0, 8.0])

    results = []
    for scaler in (scaler_default, scaler_custom):
        for dist in ("l1", "mse"):
            got = lattice_parameters_loss(lat_src, lat_tgt, scaler, dist)
            results.append((got, _reference_loss(lat_src, lat_tgt, scaler, dist)))

    # Also exercise the tuple-input (already-parameterised) path.
    params_src = lattice_to_params(lat_src)
    params_tgt = lattice_to_params(lat_tgt)
    got_tuple = lattice_parameters_loss(params_src, params_tgt,
                                        scaler_custom, "l1")
    ref_tuple = _reference_from_params(*params_src, *params_tgt,
                                       scaler_custom, "l1")
    results.append((got_tuple, ref_tuple))

    jax.block_until_ready([g for g, _ in results])

    for got, ref in results:
        np.testing.assert_allclose(np.asarray(got), np.asarray(ref),
                                   rtol=1e-5, atol=1e-5)

    print("KERNEL_OK")
</pallas_src>

<mosaic_0001>
module attributes {stable_mosaic.version = 11 : i64} {
  func.func @_lattice_loss_kernel(%arg0: i32, %arg1: memref<4x3x128xf32, #tpu.memory_space<vmem>>, %arg2: memref<2x3x1xf32, #tpu.memory_space<vmem>>, %arg3: memref<1x1xf32, #tpu.memory_space<smem>>, %arg4: memref<1xf32, #tpu.memory_space<smem>>) attributes {dimension_semantics = [#tpu.dimension_semantics<arbitrary>], iteration_bounds = array<i64: 1>, scalar_prefetch = 0 : i64, scratch_operands = 1 : i64, tpu.core_type = #tpu.core_type<tc>, window_params = [{transform_indices = @transform_0, window_bounds = array<i64: 4, 3, 128>}, {pipeline_mode = #tpu.pipeline_mode<synchronous>, transform_indices = @transform_1, window_bounds = array<i64: 2, 3, 1>}, {transform_indices = @transform_2, window_bounds = array<i64: 1, 1>}]} {
    %c0_i32 = arith.constant 0 : i32
    %0 = arith.cmpi eq, %arg0, %c0_i32 : i32
    %1 = arith.extui %0 : i1 to i32
    %c0_i32_0 = arith.constant 0 : i32
    %2 = arith.cmpi ne, %1, %c0_i32_0 : i32
    scf.if %2 {
      %cst_20 = arith.constant 0.000000e+00 : f32
      %c0_21 = arith.constant 0 : index
      %39 = memref.load %arg4[%c0_21] : memref<1xf32, #tpu.memory_space<smem>>
      memref.store %cst_20, %arg4[%c0_21] : memref<1xf32, #tpu.memory_space<smem>>
    } else {
    }
    %c0 = arith.constant 0 : index
    %c0_1 = arith.constant 0 : index
    %c0_2 = arith.constant 0 : index
    %3 = vector.load %arg1[%c0, %c0_1, %c0_2] : memref<4x3x128xf32, #tpu.memory_space<vmem>>, vector<1x3x128xf32>
    %4 = vector.shape_cast %3 : vector<1x3x128xf32> to vector<3x128xf32>
    %c1 = arith.constant 1 : index
    %c0_3 = arith.constant 0 : index
    %c0_4 = arith.constant 0 : index
    %5 = vector.load %arg1[%c1, %c0_3, %c0_4] : memref<4x3x128xf32, #tpu.memory_space<vmem>>, vector<1x3x128xf32>
    %6 = vector.shape_cast %5 : vector<1x3x128xf32> to vector<3x128xf32>
    %c2 = arith.constant 2 : index
    %c0_5 = arith.constant 0 : index
    %c0_6 = arith.constant 0 : index
    %7 = vector.load %arg1[%c2, %c0_5, %c0_6] : memref<4x3x128xf32, #tpu.memory_space<vmem>>, vector<1x3x128xf32>
    %8 = vector.shape_cast %7 : vector<1x3x128xf32> to vector<3x128xf32>
    %c3 = arith.constant 3 : index
    %c0_7 = arith.constant 0 : index
    %c0_8 = arith.constant 0 : index
    %9 = vector.load %arg1[%c3, %c0_7, %c0_8] : memref<4x3x128xf32, #tpu.memory_space<vmem>>, vector<1x3x128xf32>
    %10 = vector.shape_cast %9 : vector<1x3x128xf32> to vector<3x128xf32>
    %11 = arith.divf %4, %8 : vector<3x128xf32>
    %12 = math.log %11 : vector<3x128xf32>
    %c0_9 = arith.constant 0 : index
    %c0_10 = arith.constant 0 : index
    %c0_11 = arith.constant 0 : index
    %13 = vector.load %arg2[%c0_9, %c0_10, %c0_11] : memref<2x3x1xf32, #tpu.memory_space<vmem>>, vector<1x3x1xf32>
    %14 = vector.shape_cast %13 : vector<1x3x1xf32> to vector<3x1xf32>
    %15 = vector.broadcast %14 : vector<3x1xf32> to vector<3x128xf32>
    %16 = arith.mulf %12, %15 : vector<3x128xf32>
    %17 = arith.subf %6, %10 : vector<3x128xf32>
    %c1_12 = arith.constant 1 : index
    %c0_13 = arith.constant 0 : index
    %c0_14 = arith.constant 0 : index
    %18 = vector.load %arg2[%c1_12, %c0_13, %c0_14] : memref<2x3x1xf32, #tpu.memory_space<vmem>>, vector<1x3x1xf32>
    %19 = vector.shape_cast %18 : vector<1x3x1xf32> to vector<3x1xf32>
    %20 = vector.broadcast %19 : vector<3x1xf32> to vector<3x128xf32>
    %21 = arith.mulf %17, %20 : vector<3x128xf32>
    %22 = math.absf %16 : vector<3x128xf32>
    %23 = vector.shape_cast %22 : vector<3x128xf32> to vector<1x3x128xf32>
    %cst = arith.constant dense<0.000000e+00> : vector<1xf32>
    %24 = vector.multi_reduction <add>, %23, %cst [1, 2] : vector<1x3x128xf32> to vector<1xf32>
    %25 = vector.shape_cast %24 : vector<1xf32> to vector<1x1x1xf32>
    %26 = vector.extract %25[0, 0, 0] : f32 from vector<1x1x1xf32>
    %27 = math.absf %21 : vector<3x128xf32>
    %28 = vector.shape_cast %27 : vector<3x128xf32> to vector<1x3x128xf32>
    %cst_15 = arith.constant dense<0.000000e+00> : vector<1xf32>
    %29 = vector.multi_reduction <add>, %28, %cst_15 [1, 2] : vector<1x3x128xf32> to vector<1xf32>
    %30 = vector.shape_cast %29 : vector<1xf32> to vector<1x1x1xf32>
    %31 = vector.extract %30[0, 0, 0] : f32 from vector<1x1x1xf32>
    %32 = arith.addf %26, %31 : f32
    %c0_16 = arith.constant 0 : index
    %33 = memref.load %arg4[%c0_16] : memref<1xf32, #tpu.memory_space<smem>>
    %34 = arith.addf %33, %32 : f32
    %c0_17 = arith.constant 0 : index
    %35 = memref.load %arg4[%c0_17] : memref<1xf32, #tpu.memory_space<smem>>
    memref.store %34, %arg4[%c0_17] : memref<1xf32, #tpu.memory_space<smem>>
    %c0_i32_18 = arith.constant 0 : i32
    %36 = arith.cmpi eq, %arg0, %c0_i32_18 : i32
    %37 = arith.extui %36 : i1 to i32
    %c0_i32_19 = arith.constant 0 : i32
    %38 = arith.cmpi ne, %37, %c0_i32_19 : i32
    scf.if %38 {
      %c0_20 = arith.constant 0 : index
      %39 = memref.load %arg4[%c0_20] : memref<1xf32, #tpu.memory_space<smem>>
      %cst_21 = arith.constant 0.020833334 : f32
      %40 = arith.mulf %39, %cst_21 : f32
      %c0_22 = arith.constant 0 : index
      %c0_23 = arith.constant 0 : index
      %41 = memref.load %arg3[%c0_22, %c0_23] : memref<1x1xf32, #tpu.memory_space<smem>>
      memref.store %40, %arg3[%c0_22, %c0_23] : memref<1x1xf32, #tpu.memory_space<smem>>
    } else {
    }
    return
  }
  func.func @transform_0(%arg0: i32) -> (i32, i32, i32) {
    %c0_i32 = arith.constant 0 : i32
    %c0_i32_0 = arith.constant 0 : i32
    %c0_i32_1 = arith.constant 0 : i32
    return %c0_i32, %c0_i32_0, %arg0 : i32, i32, i32
  }
  func.func @transform_1(%arg0: i32) -> (i32, i32, i32) {
    %c0_i32 = arith.constant 0 : i32
    %c0_i32_0 = arith.constant 0 : i32
    %c0_i32_1 = arith.constant 0 : i32
    %c0_i32_2 = arith.constant 0 : i32
    return %c0_i32, %c0_i32_0, %c0_i32_1 : i32, i32, i32
  }
  func.func @transform_2(%arg0: i32) -> (i32, i32) {
    %c0_i32 = arith.constant 0 : i32
    %c0_i32_0 = arith.constant 0 : i32
    %c0_i32_1 = arith.constant 0 : i32
    return %c0_i32, %c0_i32_0 : i32, i32
  }
}

</mosaic_0001>

<bundles_post_ra>
// kernel: tpu_custom_call.1
= control target key start
LH: loop header
LB: loop body
LE: loop exit
PB: predicated region body
PF: predicated region fallthrough
CT: control target
= control target key end

     0   :  { %v120_v1 = vmov 0   ;;  %s167_s0 = inlined_call_operand.vmem [shape: f32[4,3,128], index: 0, kind: input, shape index: {}]   ;;  %s168_s1 = inlined_call_operand.vmem [shape: f32[2,3,1], index: 1, kind: input, shape index: {}]   ;;  %s169_s2 = inlined_call_operand.hbm [shape: f32[1,1], index: 2, kind: output, shape index: {}]  }
   0x1   :  { %v29_v0 = vld [vmem:[%s168_s1] sm:$0x7]  ;;  %103 = vset.pattern.permute.xlu0 %v120_v1 }
   0x2   :  { %7 = vsyncpa [#allocation4], 0  ;;  %32 = vperm.xlu0 %103, %v29_v0   ;;  %v96_v2 = vld [vmem:[%s168_s1 + $0x4] sm:$0x7]  ;;  %v94_v3 = vld [vmem:[%s167_s0 + $0x8] sm:$0x7] }
   0x3   :  { %104 = vrcp.f32 %v94_v3  ;;  %v18_v5 = vld [vmem:[%s167_s0] sm:$0x7]  ;;  %v93_v9 = vld [vmem:[%s167_s0 + $0x4] sm:$0x7]  ;;  %v95_v10 = vld [vmem:[%s167_s0 + $0xc] sm:$0x7] }
   0x4   :  { %v36_v13 = vsub.f32 %v93_v9, %v95_v10  ;;  %vm46_vm0 = vcmask 1042432   ;;  %s108_s25 = scalar_lea.hbm %s169_s2, 16 }
   0x5   :  { %p109_p0 = scmp.ne.s32.totalorder %s169_s2, %s108_s25  ;;  %p112_p1 = scmp.lt.u32.totalorder %s108_s25, %s169_s2 }
   0x6   :  { %41 = vperm.xlu0 %103, %v96_v2  }
   0x7   :  { %p114_p2 = pnand %p112_p1, %p109_p0 }
   0xd   :  { %v105_v4 = vpop.eup %104 }
   0xe   :  { %v26_v6 = vmul.f32 %v105_v4, %v18_v5 }
  0x10   :  { %106 = vlog2.f32 %v26_v6 }
  0x1a   :  { %v107_v7 = vpop.eup %106 }
  0x1b   :  { %v28_v8 = vmul.f32 0.6931472, %v107_v7 }
  0x81   :  { %v33_v11 = vpop.permute.xlu0 %32 }
  0x82   :  { %v35_v12 = vmul.f32 %v33_v11, %v28_v8 }
  0x84   :  { %v45_v14 = vand.u32 2147483647, %v35_v12 }
  0x85   :  { %v42_v15 = vpop.permute.xlu0 %41 }
  0x86   :  { %v44_v16 = vmul.f32 %v42_v15, %v36_v13  ;;  %v47_v17 = vsel %vm46_vm0, %v45_v14, 0.0 }
  0x87   :  { %48 = vadd.xlane.f32.xlu1 %v47_v17 }
  0x88   :  { %v57_v18 = vand.u32 2147483647, %v44_v16 }
  0x8a   :  { %v58_v19 = vsel %vm46_vm0, %v57_v18, 0.0 }
  0x8b   :  { %59 = vadd.xlane.f32.xlu1 %v58_v19 }
 0x114   :  { %v49_v20 = vpop.xlane.xlu1 %48 }
 0x115   :  { %v50_v21 = vrot.slane %v49_v20, 4 }
 0x117   :  { %v51_v22 = vadd.f32 %v50_v21, %v49_v20 }
 0x118   :  { %v60_v23 = vpop.xlane.xlu1 %59 }
 0x119   :  { %v52_v24 = vrot.slane %v51_v22, 2  ;;  %v61_v25 = vrot.slane %v60_v23, 4 }
 0x11b   :  { %v62_v26 = vadd.f32 %v61_v25, %v60_v23  ;;  %v53_v27 = vadd.f32 %v52_v24, %v51_v22 }
 0x11d   :  { %v63_v28 = vrot.slane %v62_v26, 2  ;;  %v54_v29 = vrot.slane %v53_v27, 1 }
 0x11f   :  { %v64_v30 = vadd.f32 %v63_v28, %v62_v26  ;;  %v55_v31 = vadd.f32 %v54_v29, %v53_v27 }
 0x121   :  { %97 = vpush %v55_v31  ;;  %v65_v32 = vrot.slane %v64_v30, 1 }
 0x123   :  { %v66_v33 = vadd.f32 %v65_v32, %v64_v30 }
 0x125   :  { %99 = vpush %v66_v33 }
 0x152   :  { %s98_s0 = spop %97 }
 0x156   :  { %s100_s20 = spop %99 }
 0x157   :  { %s68_s21 = sadd.f32 %s100_s20, %s98_s0 }
 0x159   :  { %s77_s22 = smul.f32 0.020833334, %s68_s21 }
 0x15b   :  { %79 = sst [smem:[#allocation3]] %s77_s22 }
 0x15c   :  { %117 = shalt.err (!%p114_p2)
}
 0x15d   :  { %s121_s30 = smov [#allocation3]  }
 0x15e   :  { %87 = dma.smem_to_hbm %s121_s30, 16, %s169_s2, [#allocation4]  }
 0x15f   :  { %118 = dma.done.wait [#allocation4], 16  }
 0x160   :  { %119 = vsyncadd [#allocation4], 4294967280 }
 0x161   :  { %91 = sfence }
 0x162   :  { %92 = vsyncpa [#allocation4], 1 }

</bundles_post_ra>
